<compile_context>
chip_gen: v7x
topology: tpu7x:2x2x1
jax: 0.10.0
libtpu: 0.0.40
codegen_flags: <defaults>
</compile_context>

<pallas_src>
import numpy as np
import jax
import jax.numpy as jnp
from jax import lax
from jax.experimental import pallas as pl
from jax.experimental.pallas import tpu as pltpu

F32 = jnp.float32
BF16 = jnp.bfloat16


# ----------------------------- generic Pallas kernels ----------------------

def _matmul_kernel(a_ref, b_ref, o_ref):
    o_ref[...] = jnp.dot(a_ref[...], b_ref[...], preferred_element_type=jnp.float32)


def pallas_matmul(a, b):
    a = a.astype(BF16)
    b = b.astype(BF16)
    M, K = a.shape
    _, N = b.shape
    return pl.pallas_call(
        _matmul_kernel,
        out_shape=jax.ShapeDtypeStruct((M, N), F32),
        grid=(1,),
        in_specs=[pl.BlockSpec((M, K), lambda i: (0, 0)),
                  pl.BlockSpec((K, N), lambda i: (0, 0))],
        out_specs=pl.BlockSpec((M, N), lambda i: (0, 0)),
    )(a, b)


def _linear_kernel(x_ref, w_ref, b_ref, o_ref):
    o_ref[...] = (jnp.dot(x_ref[...], w_ref[...], preferred_element_type=jnp.float32)
                  + b_ref[...])


def pallas_linear(x, w, b):
    x = x.astype(BF16)
    w = w.astype(BF16)
    M, K = x.shape
    _, N = w.shape
    return pl.pallas_call(
        _linear_kernel,
        out_shape=jax.ShapeDtypeStruct((M, N), F32),
        grid=(1,),
        in_specs=[pl.BlockSpec((M, K), lambda i: (0, 0)),
                  pl.BlockSpec((K, N), lambda i: (0, 0)),
                  pl.BlockSpec((1, N), lambda i: (0, 0))],
        out_specs=pl.BlockSpec((M, N), lambda i: (0, 0)),
    )(x, w, b.reshape(1, N).astype(F32))


# ---------------- fused HGCN layer: M GCNConvs + semantic attention --------

def _hgcn_layer_kernel(a_ref, x_ref, w_ref, b_ref, w1_ref, b1_ref, w2_ref,
                       o_ref, z_ref, s_ref):
    # grid axis = metapath m. a_ref:(1,N,N) bf16, x_ref:(N,D) bf16, w_ref:(1,D,D) bf16,
    # b_ref:(1,1,D) f32, w1_ref:(D,Ha) bf16, b1_ref:(1,Ha) f32, w2_ref:(1,Ha) f32.
    # z_ref:(M,N,D) f32 scratch, s_ref:(M,N,1) f32 scratch (per-node per-metapath score).
    m = pl.program_id(0)
    last = pl.num_programs(0) - 1

    x = x_ref[...]                                                     # (N, D) bf16
    xw = jnp.dot(x, w_ref[0], preferred_element_type=jnp.float32)      # (N, D) f32
    zm = (jnp.dot(a_ref[0], xw.astype(jnp.bfloat16),
                  preferred_element_type=jnp.float32) + b_ref[0])      # (N, D) f32
    z_ref[m] = zm

    # semantic-attention score for this metapath: tanh(z W1 + b1) . w2  (VPU reduce)
    hm = jnp.tanh(jnp.dot(zm.astype(jnp.bfloat16), w1_ref[...],
                          preferred_element_type=jnp.float32) + b1_ref[...])
    s_ref[m] = jnp.sum(hm * w2_ref[...], axis=-1, keepdims=True)       # (N, 1)

    @pl.when(m == last)
    def _():
        s = s_ref[...]                                                 # (M, N, 1)
        s = s - jnp.max(s, axis=0, keepdims=True)
        e = jnp.exp(s)
        beta = e / jnp.sum(e, axis=0, keepdims=True)                   # softmax over M
        o_ref[...] = jnp.sum(beta * z_ref[...], axis=0)                # (N, D)


def hgcn_layer(a_stack, h, w_stack, b_stack, w1t, b1, w2_row):
    Mp, N, _ = a_stack.shape
    D = h.shape[1]
    Ha = w1t.shape[1]
    return pl.pallas_call(
        _hgcn_layer_kernel,
        out_shape=jax.ShapeDtypeStruct((N, D), F32),
        grid=(Mp,),
        in_specs=[pl.BlockSpec((1, N, N), lambda m: (m, 0, 0)),
                  pl.BlockSpec((N, D), lambda m: (0, 0)),
                  pl.BlockSpec((1, D, D), lambda m: (m, 0, 0)),
                  pl.BlockSpec((1, 1, D), lambda m: (m, 0, 0)),
                  pl.BlockSpec((D, Ha), lambda m: (0, 0)),
                  pl.BlockSpec((1, Ha), lambda m: (0, 0)),
                  pl.BlockSpec((1, Ha), lambda m: (0, 0))],
        out_specs=pl.BlockSpec((N, D), lambda m: (0, 0)),
        scratch_shapes=[pltpu.VMEM((Mp, N, D), F32),
                        pltpu.VMEM((Mp, N, 1), F32)],
        compiler_params=pltpu.CompilerParams(
            dimension_semantics=("arbitrary",)),   # metapath axis is a reduction
    )(a_stack.astype(BF16), h.astype(BF16), w_stack.astype(BF16),
      b_stack.astype(F32), w1t.astype(BF16),
      b1.reshape(1, Ha).astype(F32), w2_row.reshape(1, Ha).astype(F32))


# ---------------- fused classifier linear + masked cross entropy -----------

def _cls_ce_kernel(h_ref, w_ref, b_ref, labels_ref, mask_ref, logits_ref, loss_ref):
    logits = (jnp.dot(h_ref[...], w_ref[...], preferred_element_type=jnp.float32)
              + b_ref[...])                                            # (N, C) f32
    logits_ref[...] = logits
    labels = labels_ref[...]                                           # (N, 1) int32
    mask = mask_ref[...]                                               # (N, 1) f32
    mx = jnp.max(logits, axis=1, keepdims=True)
    lse = mx + jnp.log(jnp.sum(jnp.exp(logits - mx), axis=1, keepdims=True))
    logp = logits - lse
    col = lax.broadcasted_iota(jnp.int32, logits.shape, 1)
    onehot = (col == labels).astype(jnp.float32)
    nll = -jnp.sum(onehot * logp, axis=1, keepdims=True)               # (N, 1)
    loss_ref[...] = (jnp.sum(nll * mask, keepdims=True)
                     / jnp.sum(mask, keepdims=True))


def classifier_with_loss(h, w, b, labels, mask):
    N, D = h.shape
    C = w.shape[1]
    logits, loss = pl.pallas_call(
        _cls_ce_kernel,
        out_shape=(jax.ShapeDtypeStruct((N, C), F32),
                   jax.ShapeDtypeStruct((1, 1), F32)),
        grid=(1,),
        in_specs=[pl.BlockSpec((N, D), lambda i: (0, 0)),
                  pl.BlockSpec((D, C), lambda i: (0, 0)),
                  pl.BlockSpec((1, C), lambda i: (0, 0)),
                  pl.BlockSpec((N, 1), lambda i: (0, 0)),
                  pl.BlockSpec((N, 1), lambda i: (0, 0))],
        out_specs=[pl.BlockSpec((N, C), lambda i: (0, 0)),
                   pl.BlockSpec((1, 1), lambda i: (0, 0))],
    )(h.astype(BF16), w.astype(BF16), b.reshape(1, C).astype(F32),
      labels.reshape(N, 1).astype(jnp.int32), mask.reshape(N, 1).astype(F32))
    return logits, loss[0, 0]


# ------------------------------ LSTM (Pallas input proj + lax.scan) --------

def _lstm_layer(x, p_f, p_b):
    # x: (L, Din). PyTorch gate order: i, f, g, o. Both directions share x, so
    # their input projections are fused into one Pallas linear -> (L, 8H).
    H = p_f['w_hh'].shape[1]
    w_cat = jnp.concatenate([p_f['w_ih'].T, p_b['w_ih'].T], axis=1)    # (Din, 8H)
    b_cat = jnp.concatenate([p_f['b_ih'] + p_f['b_hh'],
                             p_b['b_ih'] + p_b['b_hh']], axis=0)       # (8H,)
    gates_x = pallas_linear(x, w_cat, b_cat)                           # (L, 8H) f32
    gx_f = gates_x[:, :4 * H]
    gx_b = gates_x[:, 4 * H:][::-1]

    def make_step(w_hh_t):
        def step(carry, gx):
            h, c = carry                                               # (1, H)
            g = gx[None, :] + jnp.dot(h, w_hh_t)
            i, f, gg, o = jnp.split(g, 4, axis=1)
            i = jax.nn.sigmoid(i)
            f = jax.nn.sigmoid(f)
            gg = jnp.tanh(gg)
            o = jax.nn.sigmoid(o)
            c = f * c + i * gg
            h = o * jnp.tanh(c)
            return (h, c), h[0]
        return step

    z0 = (jnp.zeros((1, H), F32), jnp.zeros((1, H), F32))
    (hf, _), hs_f = lax.scan(make_step(p_f['w_hh'].T.astype(F32)), z0, gx_f)
    (hb, _), hs_b = lax.scan(make_step(p_b['w_hh'].T.astype(F32)), z0, gx_b)
    hs_b = hs_b[::-1]
    return jnp.concatenate([hs_f, hs_b], axis=-1), hf[0], hb[0]


def bilstm_encode(emb_seq, lstm_params):
    # 2-layer bidirectional LSTM on one packed sequence (batch=1); returns the
    # mean over the 4 final hidden states, matching h_n.mean(dim=0).squeeze(0).
    x = emb_seq
    finals = []
    for layer in range(2):
        x, hf, hb = _lstm_layer(x, lstm_params[(layer, 0)], lstm_params[(layer, 1)])
        finals.extend([hf, hb])
    # TODO(synk): inter-layer LSTM dropout omitted (inference semantics, dropout inactive).
    return jnp.mean(jnp.stack(finals, axis=0), axis=0)


# ------------------------------ parameters ---------------------------------

def _xavier(key, shape):
    fan_in, fan_out = shape[0], shape[1]
    lim = float(np.sqrt(6.0 / (fan_in + fan_out)))
    return jax.random.uniform(key, shape, F32, -lim, lim)


def init_params(key, *, vocab_size, hidden, profile_feature_size, num_metapaths,
                num_layers, num_class, att_hidden=128):
    keys = iter(jax.random.split(key, 256))
    p = {}
    p['word_embedding'] = _xavier(next(keys), (vocab_size, hidden))
    p['features_embedding'] = _xavier(next(keys), (profile_feature_size, hidden))
    lstm = {}
    k = 1.0 / float(np.sqrt(hidden))
    for layer in range(2):
        din = hidden if layer == 0 else 2 * hidden
        for d in range(2):
            lstm[(layer, d)] = {
                'w_ih': jax.random.uniform(next(keys), (4 * hidden, din), F32, -k, k),
                'w_hh': jax.random.uniform(next(keys), (4 * hidden, hidden), F32, -k, k),
                'b_ih': jax.random.uniform(next(keys), (4 * hidden,), F32, -k, k),
                'b_hh': jax.random.uniform(next(keys), (4 * hidden,), F32, -k, k),
            }
    p['lstm'] = lstm
    hgcn = []
    for _ in range(num_layers):
        gcns = []
        for _ in range(num_metapaths):
            gcns.append({'w': _xavier(next(keys), (hidden, hidden)),
                         'b': jnp.zeros((hidden,), F32)})
        sem = {'w1t': _xavier(next(keys), (hidden, att_hidden)),
               'b1': jnp.zeros((att_hidden,), F32),
               'w2': _xavier(next(keys), (1, att_hidden))}      # Linear(Ha->1, no bias)
        hgcn.append({'gcn': gcns, 'sem': sem})
    p['hgcn'] = hgcn
    p['classifier_w'] = _xavier(next(keys), (hidden, num_class))  # stored (in, out)
    p['classifier_b'] = jnp.zeros((num_class,), F32)
    return p


# ------------------------------ forward glue --------------------------------

def build_a_norm(num_nodes, edge_index, edge_weight=None):
    # Dense emulation of PyG GCNConv gcn_norm (add_remaining_self_loops, sym norm).
    src = jnp.asarray(edge_index[0], dtype=jnp.int32)
    dst = jnp.asarray(edge_index[1], dtype=jnp.int32)
    if edge_weight is None:
        w = jnp.ones((src.shape[0],), F32)
    else:
        w = jnp.asarray(edge_weight, F32)
    adj = jnp.zeros((num_nodes, num_nodes), F32).at[dst, src].add(w)
    diag = jnp.diag(adj)
    adj = adj + jnp.diag(jnp.where(diag == 0.0, 1.0, 0.0))   # add missing self-loops
    deg = jnp.sum(adj, axis=1)
    d_inv_sqrt = jnp.where(deg > 0, lax.rsqrt(deg), 0.0)
    return d_inv_sqrt[:, None] * adj * d_inv_sqrt[None, :]


def encode_node_features(node_features_np, node_type_np, params):
    n_nodes = node_features_np.shape[0]
    hidden = params['word_embedding'].shape[1]
    feats = jnp.zeros((n_nodes, hidden), F32)

    sent_idx = [i for i in range(n_nodes) if node_type_np[i] == 0]
    prof_idx = [i for i in range(n_nodes) if node_type_np[i] == 1]
    word_idx = [i for i in range(n_nodes) if node_type_np[i] not in (0, 1)]

    # sentence nodes: word embeddings + packed 2-layer BiLSTM (ragged lengths -> per node)
    if sent_idx:
        sent_feats = []
        for i in sent_idx:
            nf = node_features_np[i]
            L = int((nf != 0).sum())
            toks = jnp.asarray(nf[:L], dtype=jnp.int32)
            emb = jnp.take(params['word_embedding'], toks, axis=0)     # (L, hidden)
            sent_feats.append(bilstm_encode(emb, params['lstm']))
        feats = feats.at[jnp.asarray(sent_idx, dtype=jnp.int32)].set(
            jnp.stack(sent_feats, axis=0))

    # profile-feature nodes: ONE batched projection through features_embedding
    if prof_idx:
        xprof = jnp.asarray(node_features_np[prof_idx], dtype=F32)     # (P_cnt, P)
        proj = pallas_matmul(xprof, params['features_embedding'])      # (P_cnt, hidden)
        feats = feats.at[jnp.asarray(prof_idx, dtype=jnp.int32)].set(proj)

    # word nodes: ONE batched embedding lookup of the first token id
    if word_idx:
        ids = jnp.asarray(node_features_np[word_idx, 0], dtype=jnp.int32)
        feats = feats.at[jnp.asarray(word_idx, dtype=jnp.int32)].set(
            jnp.take(params['word_embedding'], ids, axis=0))

    # TODO(synk): use_bert / word_embedding_bert branches not implemented (disabled by default).
    return feats


def hgcn_forward(node_features_np, node_type_np, a_norms, labels_np, label_mask_np,
                 params, num_class):
    h = encode_node_features(node_features_np, node_type_np, params)   # (N, hidden)

    a_stack = jnp.stack(a_norms, axis=0).astype(BF16)                  # (M, N, N) once
    for layer_p in params['hgcn']:
        w_stack = jnp.stack([g['w'] for g in layer_p['gcn']], axis=0)          # (M, D, D)
        b_stack = jnp.stack([g['b'][None, :] for g in layer_p['gcn']], axis=0)  # (M, 1, D)
        sem = layer_p['sem']
        h = hgcn_layer(a_stack, h, w_stack, b_stack, sem['w1t'], sem['b1'], sem['w2'])

    logits, loss = classifier_with_loss(
        h, params['classifier_w'], params['classifier_b'],
        jnp.asarray(labels_np, dtype=jnp.int32),
        jnp.asarray(label_mask_np.astype(np.float32)))

    # host-side metrics, mirroring the numpy/argsort code in the reference forward
    logits_np = np.asarray(jax.device_get(logits))[label_mask_np]
    labels_m = labels_np[label_mask_np]
    pos = logits_np[:, 1]
    order = np.argsort(-pos)
    tp = sum(1 if labels_m[i] == 1 else 0 for i in order[:6])
    precision = 0 if tp == 0 else tp / 6
    recall = 0 if tp == 0 else tp / float(labels_m.sum())
    masked_logits = jnp.asarray(logits_np)
    return loss, masked_logits, precision, recall


# ------------------------------ main ----------------------------------------

if __name__ == "__main__":
    # Small config consistent with the module's constructor
    num_nodes = 10
    hidden = 32                 # hidden_size
    vocab_size = 100
    profile_feature_size = 16   # also the padded token-sequence length per node
    num_class = 2
    num_layers = 2
    edge_mask = [1, 1, 0, 1, 0, 0]
    num_metapaths = int(np.sum(edge_mask))

    key = jax.random.PRNGKey(0)
    k_inputs, k_params = jax.random.split(key)
    ik = iter(jax.random.split(k_inputs, 32))

    def rint(lo, hi, shape):
        return np.asarray(jax.random.randint(next(ik), shape, lo, hi))

    # node types: 0 = sentence (LSTM), 1 = profile feature, 2 = word
    node_type = np.array([0, 0, 1, 1, 2, 2, 2, 2, 2, 2], dtype=np.int64)
    node_features = np.zeros((num_nodes, profile_feature_size), dtype=np.int64)
    node_features[0, :7] = rint(1, vocab_size, (7,))
    node_features[1, :5] = rint(1, vocab_size, (5,))
    node_features[2] = rint(0, 2, (profile_feature_size,))
    node_features[3] = rint(0, 2, (profile_feature_size,))
    for i in range(4, num_nodes):
        node_features[i, 0] = int(rint(1, vocab_size, ()))

    labels = rint(0, num_class, (num_nodes,)).astype(np.int64)
    label_mask = np.zeros((num_nodes,), dtype=bool)
    label_mask[[0, 1, 2, 3]] = True

    word_lo, word_hi = 4, num_nodes
    w2w_edge_index = np.stack([rint(word_lo, word_hi, (8,)), rint(word_lo, word_hi, (8,))])
    w2w_edge_attr = np.asarray(jax.random.uniform(next(ik), (8,), F32, 0.5, 1.5))
    w2sq_edge_index = np.stack([rint(word_lo, word_hi, (6,)), rint(0, 2, (6,))])
    w2sq_edge_attr = np.asarray(jax.random.uniform(next(ik), (6,), F32, 0.5, 1.5))
    sq2w_edge_index = np.stack([rint(0, 2, (6,)), rint(word_lo, word_hi, (6,))])
    sq2w_edge_attr = np.asarray(jax.random.uniform(next(ik), (6,), F32, 0.5, 1.5))
    s2q_edge_index = np.array([[0, 1], [1, 0]])
    q2s_edge_index = np.array([[1, 0], [0, 1]])
    f2s_edge_index = np.stack([rint(2, 4, (4,)), rint(0, 2, (4,))])

    edge_indexes = [[w2w_edge_index, w2w_edge_attr],
                    [w2sq_edge_index, w2sq_edge_attr],
                    [sq2w_edge_index, sq2w_edge_attr],
                    [s2q_edge_index],
                    [q2s_edge_index],
                    [f2s_edge_index]]
    edge_indexes = [g for i, g in enumerate(edge_indexes) if edge_mask[i] == 1]

    a_norms = []
    for g in edge_indexes:
        if len(g) == 1:
            a_norms.append(build_a_norm(num_nodes, g[0]))
        else:
            a_norms.append(build_a_norm(num_nodes, g[0], g[1]))

    params = init_params(k_params,
                         vocab_size=vocab_size, hidden=hidden,
                         profile_feature_size=profile_feature_size,
                         num_metapaths=num_metapaths, num_layers=num_layers,
                         num_class=num_class)

    loss, logits, precision, recall = hgcn_forward(
        node_features, node_type, a_norms, labels, label_mask, params, num_class)
    jax.block_until_ready((loss, logits))
    assert np.isfinite(float(loss))
    assert logits.shape == (int(label_mask.sum()), num_class)
    print("KERNEL_OK")
</pallas_src>

<mosaic_0001>
module attributes {stable_mosaic.version = 11 : i64} {
  func.func @_linear_kernel(%arg0: i32, %arg1: memref<7x32xbf16, #tpu.memory_space<vmem>>, %arg2: memref<32x256xbf16, #tpu.memory_space<vmem>>, %arg3: memref<1x256xf32, #tpu.memory_space<vmem>>, %arg4: memref<7x256xf32, #tpu.memory_space<vmem>>) attributes {dimension_semantics = [#tpu.dimension_semantics<arbitrary>], iteration_bounds = array<i64: 1>, scalar_prefetch = 0 : i64, scratch_operands = 0 : i64, tpu.core_type = #tpu.core_type<tc>, window_params = [{pipeline_mode = #tpu.pipeline_mode<synchronous>, transform_indices = @transform_0, window_bounds = array<i64: 7, 32>}, {pipeline_mode = #tpu.pipeline_mode<synchronous>, transform_indices = @transform_1, window_bounds = array<i64: 32, 256>}, {pipeline_mode = #tpu.pipeline_mode<synchronous>, transform_indices = @transform_2, window_bounds = array<i64: 1, 256>}, {pipeline_mode = #tpu.pipeline_mode<synchronous>, transform_indices = @transform_3, window_bounds = array<i64: 7, 256>}]} {
    %c0 = arith.constant 0 : index
    %c0_0 = arith.constant 0 : index
    %0 = vector.load %arg1[%c0, %c0_0] : memref<7x32xbf16, #tpu.memory_space<vmem>>, vector<7x32xbf16>
    %c0_1 = arith.constant 0 : index
    %c0_2 = arith.constant 0 : index
    %1 = vector.load %arg2[%c0_1, %c0_2] : memref<32x256xbf16, #tpu.memory_space<vmem>>, vector<32x256xbf16>
    %cst = arith.constant dense<0.000000e+00> : vector<7x256xf32>
    %2 = tpu.matmul %0, %1, %cst {dimension_numbers = #tpu.dot_dimension_numbers<[1], [0], [0], [1], [0, 0, 1, 1], [], []>} : vector<7x32xbf16>, vector<32x256xbf16>, vector<7x256xf32> -> vector<7x256xf32>
    %c0_3 = arith.constant 0 : index
    %c0_4 = arith.constant 0 : index
    %3 = vector.load %arg3[%c0_3, %c0_4] : memref<1x256xf32, #tpu.memory_space<vmem>>, vector<1x256xf32>
    %4 = vector.broadcast %3 : vector<1x256xf32> to vector<7x256xf32>
    %5 = arith.addf %2, %4 : vector<7x256xf32>
    %c0_5 = arith.constant 0 : index
    %c0_6 = arith.constant 0 : index
    %6 = vector.load %arg4[%c0_5, %c0_6] : memref<7x256xf32, #tpu.memory_space<vmem>>, vector<7x256xf32>
    tpu.vector_store %arg4[%c0_5, %c0_6], %5 {strides = array<i32>} : memref<7x256xf32, #tpu.memory_space<vmem>>, vector<7x256xf32>,
    return
  }
  func.func @transform_0(%arg0: i32) -> (i32, i32) {
    %c0_i32 = arith.constant 0 : i32
    %c0_i32_0 = arith.constant 0 : i32
    %c0_i32_1 = arith.constant 0 : i32
    return %c0_i32, %c0_i32_0 : i32, i32
  }
  func.func @transform_1(%arg0: i32) -> (i32, i32) {
    %c0_i32 = arith.constant 0 : i32
    %c0_i32_0 = arith.constant 0 : i32
    %c0_i32_1 = arith.constant 0 : i32
    return %c0_i32, %c0_i32_0 : i32, i32
  }
  func.func @transform_2(%arg0: i32) -> (i32, i32) {
    %c0_i32 = arith.constant 0 : i32
    %c0_i32_0 = arith.constant 0 : i32
    %c0_i32_1 = arith.constant 0 : i32
    return %c0_i32, %c0_i32_0 : i32, i32
  }
  func.func @transform_3(%arg0: i32) -> (i32, i32) {
    %c0_i32 = arith.constant 0 : i32
    %c0_i32_0 = arith.constant 0 : i32
    %c0_i32_1 = arith.constant 0 : i32
    return %c0_i32, %c0_i32_0 : i32, i32
  }
}

</mosaic_0001>

<bundles_post_ra>
// kernel: tpu_custom_call.1
= control target key start
LH: loop header
LB: loop body
LE: loop exit
PB: predicated region body
PF: predicated region fallthrough
CT: control target
= control target key end

     0   :  { %8 = vsyncpa [#allocation3], 0  ;;  %s303_s0 = inlined_call_operand.hbm [shape: bf16[7,32], index: 0, kind: input, shape index: {}]   ;;  %s304_s1 = inlined_call_operand.hbm [shape: bf16[32,256], index: 1, kind: input, shape index: {}]   ;;  %s305_s2 = inlined_call_operand.vmem [shape: f32[1,256], index: 2, kind: input, shape index: {}]   ;;  %s306_s3 = inlined_call_operand.hbm [shape: f32[7,256], index: 3, kind: output, shape index: {}]  }
   0x1   :  { %9 = vsyncpa [#allocation6], 0 }
   0x2   :  { %10 = vsyncpa [#allocation4], 0  ;;  %s231_s12 = smov [#allocation2]   ;;  %s232_s14 = smov [#allocation5]  }
   0x3   :  { %s17_s13 = sshll.u32 %s231_s12, 4  ;;  %s26_s15 = sshll.u32 %s232_s14, 4  ;;  %s18_s13 = int_to_ptr.vmem [resolvable:$true] %s17_s13  ;;  %s257_s15 = int_to_ptr.vmem [resolvable:$true] %s26_s15 }
   0x4   :  { %s159_s18 = scalar_lea.hbm %s303_s0, 64 }
   0x5   :  { %p160_p0 = scmp.ne.s32.totalorder %s303_s0, %s159_s18  ;;  %p163_p1 = scmp.lt.u32.totalorder %s159_s18, %s303_s0 }
   0x7   :  { %p165_p2 = pnand %p163_p1, %p160_p0 }
   0x9   :  { %168 = shalt.err (!%p165_p2)
}
   0xa   :  { %s169_s23 = scalar_lea.vmem %s18_s13, 64  ;;  %p174_p4 = scmp.lt.s32.totalorder %s18_s13, %s18_s13 }
   0xb   :  { %p170_p3 = scmp.ne.s32.totalorder %s18_s13, %s169_s23  ;;  %p175_p5 = scmp.lt.s32.totalorder %s169_s23, %s169_s23 }
   0xd   :  { %p176_p6 = por %p175_p5, %p174_p4 }
   0xf   :  { %p177_p7 = pnand %p176_p6, %p170_p3 }
  0x11   :  { %180 = shalt.err (!%p177_p7)
}
  0x12   :  { %20 = dma.hbm_to_vmem [thread:$0]  %s303_s0, 64, %s18_s13, [#allocation3]  }
  0x13   :  { %s181_s28 = scalar_lea.hbm %s304_s1, 512 }
  0x14   :  { %p182_p8 = scmp.ne.s32.totalorder %s304_s1, %s181_s28  ;;  %p185_p9 = scmp.lt.u32.totalorder %s181_s28, %s304_s1 }
  0x16   :  { %p187_p10 = pnand %p185_p9, %p182_p8 }
  0x18   :  { %190 = shalt.err (!%p187_p10)
}
  0x19   :  { %s191_s6 = scalar_lea.vmem %s257_s15, 512  ;;  %p196_p12 = scmp.lt.s32.totalorder %s257_s15, %s257_s15 }
  0x1a   :  { %p192_p11 = scmp.ne.s32.totalorder %s257_s15, %s191_s6  ;;  %p197_p13 = scmp.lt.s32.totalorder %s191_s6, %s191_s6 }
  0x1c   :  { %p198_p0 = por %p197_p13, %p196_p12 }
  0x1e   :  { %p199_p1 = pnand %p198_p0, %p192_p11 }
  0x20   :  { %202 = shalt.err (!%p199_p1)
}
  0x21   :  { %s233_s0 = smov 128   ;;  %s234_s7 = smov 8  }
  0x22   :  { %32 = dma.hbm_to_vmem [thread:$0]  %s304_s1, 512, %s257_s15, [#allocation6], %s233_s0, %s233_s0, %s234_s7  }
  0x23   :  { %225 = dma.done.wait [#allocation3], 64  }
  0x24   :  { %226 = vsyncadd [#allocation3], 4294967232 }
  0x25   :  { %227 = dma.done.wait [#allocation6], 512  }
  0x26   :  { %228 = vsyncadd [#allocation6], 4294966784  ;;  %v235_v0 = vmov 0   ;;  %v153_v1 = vld [vmem:[#allocation5 + $0x4] ss:$8 sps:$4 sm:$0xff]   ;;  %vm79_vm0 = vcmask 261120   ;;  %v49_v6 = vlaneseq }
  0x27   :  { %115 = vmatprep.mubr.bf16.mxu0 %v235_v0  ;;  %v155_v2 = vld [vmem:[#allocation5] ss:$8 sps:$4 sm:$0xff]   ;;  %83 = vmatprep.subr.bf16.mxu0 %v153_v1  ;;  %v156_v3 = vld [vmem:[#allocation5 + $0x14] ss:$8 sps:$4 sm:$0xff]   ;;  %v158_v4 = vld [vmem:[#allocation5 + $0x10] ss:$8 sps:$4 sm:$0xff]  }
  0x28   :  { %84 = vmatpush1.bf16.msra.mxu0 %v155_v2  ;;  %v42_v5 = vld [vmem:[#allocation2] sm:$0xf]  ;;  %v50_v7 = vshrl.u32 %v49_v6, 7  ;;  %s236_s11 = smov [#allocation7]  }
  0x29   :  { %85 = vmatprep.subr.bf16.mxu0 %v156_v3  ;;  %v47_v9 = vld [vmem:[%s305_s2] sm:$0x3]  ;;  %s132_s12 = sshll.u32 %s236_s11, 4  ;;  %s133_s12 = int_to_ptr.vmem [resolvable:$true] %s132_s12 }
  0x2a   :  { %v51_v8 = vsub.s32 0, %v50_v7  ;;  %v55_v10 = vsub.s32 1, %v50_v7  ;;  %s203_s13 = scalar_lea.vmem %s133_s12, 256  ;;  %p208_p3 = scmp.lt.s32.totalorder %s133_s12, %s133_s12 }
  0x2b   :  { %p204_p2 = scmp.ne.s32.totalorder %s133_s12, %s203_s13  ;;  %p209_p4 = scmp.lt.s32.totalorder %s203_s13, %s203_s13 }
  0x2c   :  { %86 = vmatpush1.bf16.msra.mxu0 %v158_v4  ;;  %v52_v11 = vrot.slane %v47_v9, %v51_v8  ;;  %v56_v12 = vrot.slane %v47_v9, %v55_v10 }
  0x2d   :  { %p210_p5 = por %p209_p4, %p208_p3 }
  0x2f   :  { %146 = vmatmul.mubr.msk.bf16.vlgmr.msra.gmra.mrb[0].mxu0 %vm79_vm0, %v42_v5  ;;  %p211_p6 = pnand %p210_p5, %p204_p2 }
 0x102   :  { %v117_v13 = vpop.f32.mrb[0].mxu0 }
 0x103   :  { %v118_v14 = vadd.f32 %v117_v13, %v52_v11  ;;  %v119_v15 = vpop.f32.mrb[1].mxu0 }
 0x104   :  { %v120_v16 = vadd.f32 %v119_v15, %v56_v12  ;;  %v121_v17 = vpop.f32.mrb[2].mxu0 }
 0x105   :  { %124 = vst [vmem:[#allocation7] sm:$0x7f] %v118_v14  ;;  %v122_v18 = vpop.f32.mrb[3].mxu0 }
 0x106   :  { %125 = vst [vmem:[#allocation7 + $0x8] sm:$0x7f] %v120_v16 }
 0x107   :  { %214 = shalt.err (!%p211_p6)
}
 0x108   :  { %s215_s15 = scalar_lea.hbm %s306_s3, 256 }
 0x109   :  { %p216_p7 = scmp.ne.s32.totalorder %s306_s3, %s215_s15  ;;  %p219_p8 = scmp.lt.u32.totalorder %s215_s15, %s306_s3 }
 0x10b   :  { %p221_p9 = pnand %p219_p8, %p216_p7 }
 0x10d   :  { %224 = shalt.err (!%p221_p9)
}
 0x10e   :  { %135 = dma.vmem_to_hbm [thread:$0]  %s133_s12, 256, %s306_s3, [#allocation4]  }
 0x10f   :  { %229 = dma.done.wait [#allocation4], 256  }
 0x110   :  { %230 = vsyncadd [#allocation4], 4294967040 }
 0x111   :  { %139 = vsyncpa [#allocation3], 1 }
 0x112   :  { %140 = vsyncpa [#allocation6], 1 }
 0x113   :  { %141 = vsyncpa [#allocation4], 1 }

</bundles_post_ra>
